<compile_context>
chip_gen: v6e
topology: v6e:2x2x1
jax: 0.10.0
libtpu: 0.0.40
codegen_flags: <defaults>
</compile_context>

<pallas_src>
import jax
import jax.numpy as jnp
from jax.experimental import pallas as pl
from jax.experimental.pallas import tpu as pltpu

HIDDEN = 256
MAX_TILE_B = 2048                      # rows per batch tile (working set ~10 MiB)
VMEM_LIMIT_BYTES = 32 * 1024 * 1024    # > v5e's 16 MiB default, <= v7x physical


def _qfunc_kernel(obs_ref, act_ref, w1o_ref, w1a_ref, b1_ref, w2_ref, b2_ref,
                  w3_ref, b3_ref, w4_ref, b4_ref, o_ref):
    # obs_ref: (TILE_B, obs_dim) bf16; act_ref: (TILE_B, act_dim) bf16
    # w1o/w1a/w2/w3: (in, 256) bf16; b1/b2/b3: (1, 256) f32
    # w4_ref: (1, 256) f32 row; b4_ref: (1, 1) f32; o_ref: (TILE_B, 1) f32
    h = jnp.dot(obs_ref[...], w1o_ref[...], preferred_element_type=jnp.float32)
    h = h + jnp.dot(act_ref[...], w1a_ref[...],
                    preferred_element_type=jnp.float32)
    h = jnp.maximum(h + b1_ref[...], 0.0).astype(jnp.bfloat16)

    h = jnp.dot(h, w2_ref[...], preferred_element_type=jnp.float32)
    h = jnp.maximum(h + b2_ref[...], 0.0).astype(jnp.bfloat16)

    h = jnp.dot(h, w3_ref[...], preferred_element_type=jnp.float32)
    h = jnp.maximum(h + b3_ref[...], 0.0)          # stays f32 for the reduce

    # Final 256 -> 1 layer on the VPU/XLU: multiply by the w4 row, fold the two
    # 128-lane halves with a VALU add, then lane-reduce only 128 lanes.
    prod = h * w4_ref[...]                          # (TILE_B, 256) f32
    half = HIDDEN // 2
    folded = prod[:, :half] + prod[:, half:]        # (TILE_B, 128), vreg-aligned
    q = jnp.sum(folded, axis=-1, keepdims=True)     # (TILE_B, 1)
    o_ref[...] = (q + b4_ref[...]).astype(o_ref.dtype)


def _pick_tile_b(bflat):
    """Batch tile: full block for tiny batches; otherwise a multiple of 256
    (MXU row granule) with an even number of grid steps (v7x has 2 TCs)."""
    if bflat <= 256:
        return bflat
    steps = max(2, pl.cdiv(bflat, MAX_TILE_B))
    steps += steps % 2                              # even -> balanced megacore
    tile = 256 * pl.cdiv(pl.cdiv(bflat, steps), 256)
    return min(tile, MAX_TILE_B)


def _mlp_pallas(obs, act, w1o, w1a, b1, w2, b2, w3, b3, w4row, b4):
    """obs: (B, obs_dim) bf16; act: (N, B, act_dim) bf16 -> (N, B, 1) f32."""
    bflat, obs_dim = obs.shape
    n_act, _, act_dim = act.shape
    tile_b = _pick_tile_b(bflat)
    num_b_tiles = pl.cdiv(bflat, tile_b)

    def const_full(arr):
        # constant-index full block: stays VMEM-resident, never re-DMA'd
        return pl.BlockSpec(arr.shape, lambda i, n: (0, 0))

    flops = 2 * bflat * n_act * (
        (obs_dim + act_dim) * HIDDEN + 2 * HIDDEN * HIDDEN + HIDDEN)
    weight_bytes = (2 * ((obs_dim + act_dim) * HIDDEN + 2 * HIDDEN * HIDDEN)
                    + 4 * HIDDEN + 4 * (3 * HIDDEN + 1))
    bytes_accessed = (2 * bflat * obs_dim + 2 * n_act * bflat * act_dim
                      + weight_bytes + 4 * n_act * bflat)

    return pl.pallas_call(
        _qfunc_kernel,
        out_shape=jax.ShapeDtypeStruct((n_act, bflat, 1), jnp.float32),
        grid_spec=pltpu.PrefetchScalarGridSpec(
            num_scalar_prefetch=0,
            grid=(num_b_tiles, n_act),
            in_specs=[
                pl.BlockSpec((tile_b, obs_dim), lambda i, n: (i, 0)),
                pl.BlockSpec((None, tile_b, act_dim), lambda i, n: (n, i, 0)),
                const_full(w1o), const_full(w1a), const_full(b1),
                const_full(w2), const_full(b2),
                const_full(w3), const_full(b3),
                const_full(w4row), const_full(b4),
            ],
            out_specs=pl.BlockSpec((None, tile_b, 1), lambda i, n: (n, i, 0)),
        ),
        compiler_params=pltpu.CompilerParams(
            dimension_semantics=("parallel", "parallel"),
            vmem_limit_bytes=VMEM_LIMIT_BYTES),
        cost_estimate=pl.CostEstimate(
            flops=flops, transcendentals=0, bytes_accessed=bytes_accessed),
    )(obs, act, w1o, w1a, b1, w2, b2, w3, b3, w4row, b4)


def init_params(key, observation_dim, action_dim):
    """Synthetic init mirroring the module's layer shapes (weights stored (in, out)).

    Hidden layers: PyTorch default Linear init (uniform +/- 1/sqrt(fan_in)).
    Final layer:   xavier_uniform with gain=0.01 (init_module_weights, orthogonal_init=False);
                   its bias keeps the PyTorch default init.
    """
    d_in = observation_dim + action_dim
    dims = [(d_in, HIDDEN), (HIDDEN, HIDDEN), (HIDDEN, HIDDEN), (HIDDEN, 1)]
    keys = jax.random.split(key, 2 * len(dims))
    params = []
    for li, (fin, fout) in enumerate(dims):
        kw, kb = keys[2 * li], keys[2 * li + 1]
        if li == len(dims) - 1:
            gain = 0.01
            bound = gain * jnp.sqrt(6.0 / (fin + fout))
            w = jax.random.uniform(kw, (fin, fout), jnp.float32, -bound, bound)
            bb = 1.0 / jnp.sqrt(fin)
            b = jax.random.uniform(kb, (1, fout), jnp.float32, -bb, bb)
        else:
            bound = 1.0 / jnp.sqrt(fin)
            w = jax.random.uniform(kw, (fin, fout), jnp.float32, -bound, bound)
            b = jax.random.uniform(kb, (1, fout), jnp.float32, -bound, bound)
        params.append((w, b))
    return params


@jax.jit
def fully_connected_q_forward(observations, actions, w1, b1, w2, b2, w3, b3,
                              w4, b4):
    """Mirrors FullyConnectedQFunction.forward (hidden_activation='relu').

    observations: (B, obs_dim)
    actions:      (B, act_dim)     -> returns (B,)
                  (B, N, act_dim)  -> returns (B, N)
    """
    batch_size, obs_dim = observations.shape
    multiple_actions = (actions.ndim == 3 and observations.ndim == 2)

    obs = observations.astype(jnp.bfloat16)                       # (B, obs_dim)
    if multiple_actions:
        act = jnp.transpose(actions, (1, 0, 2)).astype(jnp.bfloat16)  # (N, B, A)
    else:
        act = actions.astype(jnp.bfloat16)[None, :, :]                # (1, B, A)

    # W1 stored (in, out) with the obs rows first (matches torch.cat order).
    w1o = w1[:obs_dim].astype(jnp.bfloat16)
    w1a = w1[obs_dim:].astype(jnp.bfloat16)

    out = _mlp_pallas(
        obs, act,
        w1o, w1a, b1.astype(jnp.float32),
        w2.astype(jnp.bfloat16), b2.astype(jnp.float32),
        w3.astype(jnp.bfloat16), b3.astype(jnp.float32),
        w4.T.astype(jnp.float32), b4.astype(jnp.float32))          # (N, B, 1)

    if multiple_actions:
        return jnp.transpose(out[:, :, 0], (1, 0))                 # (B, N)
    return out[0, :, 0]                                            # (B,)


def _reference_forward(observations, actions, params):
    """Pure-jnp reference with the same bf16-operand / f32-accumulate numerics."""
    batch_size = observations.shape[0]
    multiple_actions = (actions.ndim == 3 and observations.ndim == 2)
    if multiple_actions:
        n = actions.shape[1]
        observations = jnp.repeat(observations[:, None, :], n, axis=1).reshape(
            -1, observations.shape[-1])
        actions = actions.reshape(-1, actions.shape[-1])
    x = jnp.concatenate([observations, actions], axis=-1).astype(jnp.bfloat16)

    (w1, b1), (w2, b2), (w3, b3), (w4, b4) = params
    bf = lambda a: a.astype(jnp.bfloat16)
    h = jnp.maximum(
        jnp.dot(x, bf(w1), preferred_element_type=jnp.float32) + b1,
        0.0).astype(jnp.bfloat16)
    h = jnp.maximum(
        jnp.dot(h, bf(w2), preferred_element_type=jnp.float32) + b2,
        0.0).astype(jnp.bfloat16)
    h = jnp.maximum(
        jnp.dot(h, bf(w3), preferred_element_type=jnp.float32) + b3, 0.0)
    w4_row = w4.astype(jnp.float32).T                     # (1, 256)
    q = jnp.sum(h * w4_row, axis=-1) + b4[0, 0]
    if multiple_actions:
        q = q.reshape(batch_size, -1)
    return q


if __name__ == "__main__":
    obs_dim, act_dim = 16, 8
    batch, n_actions = 2, 4

    key = jax.random.PRNGKey(0)
    (k_params, k_obs, k_act, k_act3, k_obs_big, k_act_big,
     k_act_big3) = jax.random.split(key, 7)

    params = init_params(k_params, obs_dim, act_dim)
    flat_params = tuple(p for pair in params for p in pair)

    observations = jax.random.normal(k_obs, (batch, obs_dim), jnp.float32)
    actions_2d = jax.random.normal(k_act, (batch, act_dim), jnp.float32)
    actions_3d = jax.random.normal(k_act3, (batch, n_actions, act_dim),
                                   jnp.float32)

    # single-action path: (B,) output
    q2 = jax.block_until_ready(
        fully_connected_q_forward(observations, actions_2d, *flat_params))
    assert q2.shape == (batch,)

    # multiple-action path: (B, N) output (N is a grid axis; obs never repeated)
    q3 = jax.block_until_ready(
        fully_connected_q_forward(observations, actions_3d, *flat_params))
    assert q3.shape == (batch, n_actions)

    # bigger batch: exercises a 2-step batch grid with a partial last block
    big_b = 290
    obs_big = jax.random.normal(k_obs_big, (big_b, obs_dim), jnp.float32)
    act_big = jax.random.normal(k_act_big, (big_b, act_dim), jnp.float32)
    qb = jax.block_until_ready(
        fully_connected_q_forward(obs_big, act_big, *flat_params))
    assert qb.shape == (big_b,)

    # bigger batch + multiple actions: both grid axes > 1
    act_big3 = jax.random.normal(k_act_big3, (big_b, 3, act_dim), jnp.float32)
    qb3 = jax.block_until_ready(
        fully_connected_q_forward(obs_big, act_big3, *flat_params))
    assert qb3.shape == (big_b, 3)

    # correctness vs bf16-matched pure-jnp reference
    ref2 = _reference_forward(observations, actions_2d, params)
    ref3 = _reference_forward(observations, actions_3d, params)
    refb = _reference_forward(obs_big, act_big, params)
    refb3 = _reference_forward(obs_big, act_big3, params)
    assert jnp.allclose(q2, ref2, atol=1e-4, rtol=1e-3)
    assert jnp.allclose(q3, ref3, atol=1e-4, rtol=1e-3)
    assert jnp.allclose(qb, refb, atol=1e-4, rtol=1e-3)
    assert jnp.allclose(qb3, refb3, atol=1e-4, rtol=1e-3)

    print("KERNEL_OK")
</pallas_src>

<mosaic_0001>
module attributes {stable_mosaic.version = 11 : i64} {
  func.func @_qfunc_kernel(%arg0: i32, %arg1: i32, %arg2: memref<2x16xbf16, #tpu.memory_space<vmem>>, %arg3: memref<1x2x8xbf16, #tpu.memory_space<vmem>>, %arg4: memref<16x256xbf16, #tpu.memory_space<vmem>>, %arg5: memref<8x256xbf16, #tpu.memory_space<vmem>>, %arg6: memref<1x256xf32, #tpu.memory_space<vmem>>, %arg7: memref<256x256xbf16, #tpu.memory_space<vmem>>, %arg8: memref<1x256xf32, #tpu.memory_space<vmem>>, %arg9: memref<256x256xbf16, #tpu.memory_space<vmem>>, %arg10: memref<1x256xf32, #tpu.memory_space<vmem>>, %arg11: memref<1x256xf32, #tpu.memory_space<vmem>>, %arg12: memref<1x1xf32, #tpu.memory_space<vmem>>, %arg13: memref<1x2x1xf32, #tpu.memory_space<vmem>>) attributes {dimension_semantics = [#tpu.dimension_semantics<parallel>, #tpu.dimension_semantics<parallel>], iteration_bounds = array<i64: 1, 1>, scalar_prefetch = 0 : i64, scratch_operands = 0 : i64, tpu.core_type = #tpu.core_type<tc>, window_params = [{transform_indices = @transform_0, window_bounds = array<i64: 2, 16>}, {transform_indices = @transform_1, window_bounds = array<i64: 1, 2, 8>}, {pipeline_mode = #tpu.pipeline_mode<synchronous>, transform_indices = @transform_2, window_bounds = array<i64: 16, 256>}, {pipeline_mode = #tpu.pipeline_mode<synchronous>, transform_indices = @transform_3, window_bounds = array<i64: 8, 256>}, {pipeline_mode = #tpu.pipeline_mode<synchronous>, transform_indices = @transform_4, window_bounds = array<i64: 1, 256>}, {pipeline_mode = #tpu.pipeline_mode<synchronous>, transform_indices = @transform_5, window_bounds = array<i64: 256, 256>}, {pipeline_mode = #tpu.pipeline_mode<synchronous>, transform_indices = @transform_6, window_bounds = array<i64: 1, 256>}, {pipeline_mode = #tpu.pipeline_mode<synchronous>, transform_indices = @transform_7, window_bounds = array<i64: 256, 256>}, {pipeline_mode = #tpu.pipeline_mode<synchronous>, transform_indices = @transform_8, window_bounds = array<i64: 1, 256>}, {pipeline_mode = #tpu.pipeline_mode<synchronous>, transform_indices = @transform_9, window_bounds = array<i64: 1, 256>}, {pipeline_mode = #tpu.pipeline_mode<synchronous>, transform_indices = @transform_10, window_bounds = array<i64: 1, 1>}, {transform_indices = @transform_11, window_bounds = array<i64: 1, 2, 1>}]} {
    %c0 = arith.constant 0 : index
    %c0_0 = arith.constant 0 : index
    %0 = vector.load %arg2[%c0, %c0_0] : memref<2x16xbf16, #tpu.memory_space<vmem>>, vector<2x16xbf16>
    %c0_1 = arith.constant 0 : index
    %c0_2 = arith.constant 0 : index
    %1 = vector.load %arg4[%c0_1, %c0_2] : memref<16x256xbf16, #tpu.memory_space<vmem>>, vector<16x256xbf16>
    %cst = arith.constant dense<0.000000e+00> : vector<2x256xf32>
    %2 = tpu.matmul %0, %1, %cst {dimension_numbers = #tpu.dot_dimension_numbers<[1], [0], [0], [1], [0, 0, 1, 1], [], []>} : vector<2x16xbf16>, vector<16x256xbf16>, vector<2x256xf32> -> vector<2x256xf32>
    %c0_3 = arith.constant 0 : index
    %c0_4 = arith.constant 0 : index
    %c0_5 = arith.constant 0 : index
    %3 = vector.load %arg3[%c0_3, %c0_4, %c0_5] : memref<1x2x8xbf16, #tpu.memory_space<vmem>>, vector<1x2x8xbf16>
    %4 = vector.shape_cast %3 : vector<1x2x8xbf16> to vector<2x8xbf16>
    %c0_6 = arith.constant 0 : index
    %c0_7 = arith.constant 0 : index
    %5 = vector.load %arg5[%c0_6, %c0_7] : memref<8x256xbf16, #tpu.memory_space<vmem>>, vector<8x256xbf16>
    %cst_8 = arith.constant dense<0.000000e+00> : vector<2x256xf32>
    %6 = tpu.matmul %4, %5, %cst_8 {dimension_numbers = #tpu.dot_dimension_numbers<[1], [0], [0], [1], [0, 0, 1, 1], [], []>} : vector<2x8xbf16>, vector<8x256xbf16>, vector<2x256xf32> -> vector<2x256xf32>
    %7 = arith.addf %2, %6 : vector<2x256xf32>
    %c0_9 = arith.constant 0 : index
    %c0_10 = arith.constant 0 : index
    %8 = vector.load %arg6[%c0_9, %c0_10] : memref<1x256xf32, #tpu.memory_space<vmem>>, vector<1x256xf32>
    %9 = vector.broadcast %8 : vector<1x256xf32> to vector<2x256xf32>
    %10 = arith.addf %7, %9 : vector<2x256xf32>
    %cst_11 = arith.constant 0.000000e+00 : f32
    %11 = vector.broadcast %cst_11 : f32 to vector<2x256xf32>
    %12 = arith.maximumf %10, %11 : vector<2x256xf32>
    %13 = arith.truncf %12 : vector<2x256xf32> to vector<2x256xbf16>
    %c0_12 = arith.constant 0 : index
    %c0_13 = arith.constant 0 : index
    %14 = vector.load %arg7[%c0_12, %c0_13] : memref<256x256xbf16, #tpu.memory_space<vmem>>, vector<256x256xbf16>
    %cst_14 = arith.constant dense<0.000000e+00> : vector<2x256xf32>
    %15 = tpu.matmul %13, %14, %cst_14 {dimension_numbers = #tpu.dot_dimension_numbers<[1], [0], [0], [1], [0, 0, 1, 1], [], []>} : vector<2x256xbf16>, vector<256x256xbf16>, vector<2x256xf32> -> vector<2x256xf32>
    %c0_15 = arith.constant 0 : index
    %c0_16 = arith.constant 0 : index
    %16 = vector.load %arg8[%c0_15, %c0_16] : memref<1x256xf32, #tpu.memory_space<vmem>>, vector<1x256xf32>
    %17 = vector.broadcast %16 : vector<1x256xf32> to vector<2x256xf32>
    %18 = arith.addf %15, %17 : vector<2x256xf32>
    %cst_17 = arith.constant 0.000000e+00 : f32
    %19 = vector.broadcast %cst_17 : f32 to vector<2x256xf32>
    %20 = arith.maximumf %18, %19 : vector<2x256xf32>
    %21 = arith.truncf %20 : vector<2x256xf32> to vector<2x256xbf16>
    %c0_18 = arith.constant 0 : index
    %c0_19 = arith.constant 0 : index
    %22 = vector.load %arg9[%c0_18, %c0_19] : memref<256x256xbf16, #tpu.memory_space<vmem>>, vector<256x256xbf16>
    %cst_20 = arith.constant dense<0.000000e+00> : vector<2x256xf32>
    %23 = tpu.matmul %21, %22, %cst_20 {dimension_numbers = #tpu.dot_dimension_numbers<[1], [0], [0], [1], [0, 0, 1, 1], [], []>} : vector<2x256xbf16>, vector<256x256xbf16>, vector<2x256xf32> -> vector<2x256xf32>
    %c0_21 = arith.constant 0 : index
    %c0_22 = arith.constant 0 : index
    %24 = vector.load %arg10[%c0_21, %c0_22] : memref<1x256xf32, #tpu.memory_space<vmem>>, vector<1x256xf32>
    %25 = vector.broadcast %24 : vector<1x256xf32> to vector<2x256xf32>
    %26 = arith.addf %23, %25 : vector<2x256xf32>
    %cst_23 = arith.constant 0.000000e+00 : f32
    %27 = vector.broadcast %cst_23 : f32 to vector<2x256xf32>
    %28 = arith.maximumf %26, %27 : vector<2x256xf32>
    %c0_24 = arith.constant 0 : index
    %c0_25 = arith.constant 0 : index
    %29 = vector.load %arg11[%c0_24, %c0_25] : memref<1x256xf32, #tpu.memory_space<vmem>>, vector<1x256xf32>
    %30 = vector.broadcast %29 : vector<1x256xf32> to vector<2x256xf32>
    %31 = arith.mulf %28, %30 : vector<2x256xf32>
    %32 = vector.extract_strided_slice %31 {offsets = [0, 0], sizes = [2, 128], strides = [1, 1]} : vector<2x256xf32> to vector<2x128xf32>
    %33 = vector.extract_strided_slice %31 {offsets = [0, 128], sizes = [2, 128], strides = [1, 1]} : vector<2x256xf32> to vector<2x128xf32>
    %34 = arith.addf %32, %33 : vector<2x128xf32>
    %cst_26 = arith.constant dense<0.000000e+00> : vector<2xf32>
    %35 = vector.multi_reduction <add>, %34, %cst_26 [1] : vector<2x128xf32> to vector<2xf32>
    %36 = vector.shape_cast %35 : vector<2xf32> to vector<2x1xf32>
    %c0_27 = arith.constant 0 : index
    %c0_28 = arith.constant 0 : index
    %37 = vector.load %arg12[%c0_27, %c0_28] : memref<1x1xf32, #tpu.memory_space<vmem>>, vector<1x1xf32>
    %38 = vector.broadcast %37 : vector<1x1xf32> to vector<2x1xf32>
    %39 = arith.addf %36, %38 : vector<2x1xf32>
    %c0_29 = arith.constant 0 : index
    %c0_30 = arith.constant 0 : index
    %c0_31 = arith.constant 0 : index
    %40 = vector.load %arg13[%c0_29, %c0_30, %c0_31] : memref<1x2x1xf32, #tpu.memory_space<vmem>>, vector<1x2x1xf32>
    %41 = vector.shape_cast %40 : vector<1x2x1xf32> to vector<2x1xf32>
    %42 = vector.shape_cast %39 : vector<2x1xf32> to vector<1x2x1xf32>
    tpu.vector_store %arg13[%c0_29, %c0_30, %c0_31], %42 {strides = array<i32>} : memref<1x2x1xf32, #tpu.memory_space<vmem>>, vector<1x2x1xf32>,
    return
  }
  func.func @transform_0(%arg0: i32, %arg1: i32) -> (i32, i32) {
    %c0_i32 = arith.constant 0 : i32
    %c0_i32_0 = arith.constant 0 : i32
    return %arg0, %c0_i32 : i32, i32
  }
  func.func @transform_1(%arg0: i32, %arg1: i32) -> (i32, i32, i32) {
    %c0_i32 = arith.constant 0 : i32
    %c0_i32_0 = arith.constant 0 : i32
    return %arg1, %arg0, %c0_i32 : i32, i32, i32
  }
  func.func @transform_2(%arg0: i32, %arg1: i32) -> (i32, i32) {
    %c0_i32 = arith.constant 0 : i32
    %c0_i32_0 = arith.constant 0 : i32
    %c0_i32_1 = arith.constant 0 : i32
    return %c0_i32, %c0_i32_0 : i32, i32
  }
  func.func @transform_3(%arg0: i32, %arg1: i32) -> (i32, i32) {
    %c0_i32 = arith.constant 0 : i32
    %c0_i32_0 = arith.constant 0 : i32
    %c0_i32_1 = arith.constant 0 : i32
    return %c0_i32, %c0_i32_0 : i32, i32
  }
  func.func @transform_4(%arg0: i32, %arg1: i32) -> (i32, i32) {
    %c0_i32 = arith.constant 0 : i32
    %c0_i32_0 = arith.constant 0 : i32
    %c0_i32_1 = arith.constant 0 : i32
    return %c0_i32, %c0_i32_0 : i32, i32
  }
  func.func @transform_5(%arg0: i32, %arg1: i32) -> (i32, i32) {
    %c0_i32 = arith.constant 0 : i32
    %c0_i32_0 = arith.constant 0 : i32
    %c0_i32_1 = arith.constant 0 : i32
    return %c0_i32, %c0_i32_0 : i32, i32
  }
  func.func @transform_6(%arg0: i32, %arg1: i32) -> (i32, i32) {
    %c0_i32 = arith.constant 0 : i32
    %c0_i32_0 = arith.constant 0 : i32
    %c0_i32_1 = arith.constant 0 : i32
    return %c0_i32, %c0_i32_0 : i32, i32
  }
  func.func @transform_7(%arg0: i32, %arg1: i32) -> (i32, i32) {
    %c0_i32 = arith.constant 0 : i32
    %c0_i32_0 = arith.constant 0 : i32
    %c0_i32_1 = arith.constant 0 : i32
    return %c0_i32, %c0_i32_0 : i32, i32
  }
  func.func @transform_8(%arg0: i32, %arg1: i32) -> (i32, i32) {
    %c0_i32 = arith.constant 0 : i32
    %c0_i32_0 = arith.constant 0 : i32
    %c0_i32_1 = arith.constant 0 : i32
    return %c0_i32, %c0_i32_0 : i32, i32
  }
  func.func @transform_9(%arg0: i32, %arg1: i32) -> (i32, i32) {
    %c0_i32 = arith.constant 0 : i32
    %c0_i32_0 = arith.constant 0 : i32
    %c0_i32_1 = arith.constant 0 : i32
    return %c0_i32, %c0_i32_0 : i32, i32
  }
  func.func @transform_10(%arg0: i32, %arg1: i32) -> (i32, i32) {
    %c0_i32 = arith.constant 0 : i32
    %c0_i32_0 = arith.constant 0 : i32
    %c0_i32_1 = arith.constant 0 : i32
    return %c0_i32, %c0_i32_0 : i32, i32
  }
  func.func @transform_11(%arg0: i32, %arg1: i32) -> (i32, i32, i32) {
    %c0_i32 = arith.constant 0 : i32
    %c0_i32_0 = arith.constant 0 : i32
    return %arg1, %arg0, %c0_i32 : i32, i32, i32
  }
}

</mosaic_0001>

<bundles_post_ra>
// kernel: fully_connected_q_forward.1
= control target key start
LH: loop header
LB: loop body
LE: loop exit
PB: predicated region body
PF: predicated region fallthrough
CT: control target
= control target key end

     0   :  { %vm55_vm0 = vcmask 1043456   ;;  %v879_v1 = vmov 0   ;;  %vm51_vm1 = vcmask 64512   ;;  %vm113_vm2 = vcmask 130048   ;;  %s1177_s3 = inlined_call_operand.vmem [shape: bf16[8,256], index: 3, kind: input, shape index: {}]   ;;  %s1178_s2 = inlined_call_operand.vmem [shape: bf16[16,256], index: 2, kind: input, shape index: {}]   ;;  %s1179_s1 = inlined_call_operand.vmem [shape: bf16[1,2,8], index: 1, kind: input, shape index: {}]   ;;  %s1180_s5 = inlined_call_operand.vmem [shape: bf16[256,256], index: 5, kind: input, shape index: {}]   ;;  %s1181_s0 = inlined_call_operand.vmem [shape: bf16[2,16], index: 0, kind: input, shape index: {}]   ;;  %s1182_s7 = inlined_call_operand.vmem [shape: bf16[256,256], index: 7, kind: input, shape index: {}]   ;;  %s1183_s4 = inlined_call_operand.vmem [shape: f32[1,256], index: 4, kind: input, shape index: {}]   ;;  %s1184_s6 = inlined_call_operand.vmem [shape: f32[1,256], index: 6, kind: input, shape index: {}]   ;;  %s1185_s10 = inlined_call_operand.<no memory space> [shape: f32[1,1], index: 10, kind: input, shape index: {}]   ;;  %s1186_s8 = inlined_call_operand.vmem [shape: f32[1,256], index: 8, kind: input, shape index: {}]   ;;  %s1187_s9 = inlined_call_operand.vmem [shape: f32[1,256], index: 9, kind: input, shape index: {}]   ;;  %s1188_s11 = inlined_call_operand.vmem [shape: f32[1,2,1], index: 11, kind: output, shape index: {}]  }
   0x1   :  { %v45_v0 = vld [vmem:[%s1177_s3] sm:$0xff]  ;;  %94 = vmatprep.mubr.bf16.mxu0 %v879_v1  ;;  %149 = vmatprep.mubr.bf16.mxu1 %v879_v1  ;;  %v785_v8 = vld [vmem:[%s1180_s5 + $0x74] ss:$8 sps:$4 sm:$0xff]   ;;  %v783_v10 = vld [vmem:[%s1180_s5 + $0x70] ss:$8 sps:$4 sm:$0xff]   ;;  %vm687_vm3 = vcmask 1041408  }
   0x2   :  { %v706_v2 = vcombine.high %v45_v0, %v45_v0  ;;  %v779_v3 = vld [vmem:[%s1178_s2 + $0x4] ss:$8 sps:$4 sm:$0xff]   ;;  %v705_v4 = vcombine.low %v45_v0, %v45_v0  ;;  %v782_v5 = vld [vmem:[%s1178_s2] ss:$8 sps:$4 sm:$0xff]   ;;  %v791_v13 = vld [vmem:[%s1180_s5 + $0x54] ss:$8 sps:$4 sm:$0xff]  }
   0x3   :  { %131 = vmatprep.subr.bf16.mxu1 %v779_v3  ;;  %v44_v7 = vld [vmem:[%s1179_s1] sm:$0x1]  ;;  %v788_v11 = vld [vmem:[%s1180_s5 + $0x64] ss:$8 sps:$4 sm:$0xff]   ;;  %v789_v14 = vld [vmem:[%s1180_s5 + $0x50] ss:$8 sps:$4 sm:$0xff]  }
   0x4   :  { %707 = vmatprep.subr.msk.bf16.mxu0 %vm55_vm0, %v706_v2  ;;  %v57_v6 = vsel %vm55_vm0, %v705_v4, 0  ;;  %132 = vmatpush1.bf16.msra.mxu1 %v782_v5  ;;  %v41_v9 = vld [vmem:[%s1181_s0] sm:$0x1]  ;;  %v794_v15 = vld [vmem:[%s1180_s5 + $0x44] ss:$8 sps:$4 sm:$0xff]   ;;  %v160_v5 = vlaneseq  ;;  %vm699_vm4 = vcmask 1024  }
   0x5   :  { %77 = vmatpush1.bf16.msra.mxu0 %v57_v6  ;;  %v786_v12 = vld [vmem:[%s1180_s5 + $0x60] ss:$8 sps:$4 sm:$0xff]   ;;  %v797_v17 = vld [vmem:[%s1180_s5 + $0x34] ss:$8 sps:$4 sm:$0xff]   ;;  %v795_v18 = vld [vmem:[%s1180_s5 + $0x30] ss:$8 sps:$4 sm:$0xff]  }
   0x6   :  { %380 = vmatprep.subr.bf16.mxu0 %v785_v8  ;;  %v792_v16 = vld [vmem:[%s1180_s5 + $0x40] ss:$8 sps:$4 sm:$0xff]   ;;  %v800_v19 = vld [vmem:[%s1180_s5 + $0x24] ss:$8 sps:$4 sm:$0xff]   ;;  %v803_v21 = vld [vmem:[%s1180_s5 + $0x14] ss:$8 sps:$4 sm:$0xff]  }
   0x7   :  { %711 = vmatmul.mubr.msk.bf16.vlgmr.msra.gmra.mxu1 %vm113_vm2, %v41_v9  ;;  %v798_v20 = vld [vmem:[%s1180_s5 + $0x20] ss:$8 sps:$4 sm:$0xff]   ;;  %v801_v22 = vld [vmem:[%s1180_s5 + $0x10] ss:$8 sps:$4 sm:$0xff]   ;;  %v806_v23 = vld [vmem:[%s1180_s5 + $0x4] ss:$8 sps:$4 sm:$0xff]  }
   0x8   :  { %708 = vmatmul.mubr.msk.bf16.vlgmr.msra.gmra.mxu0 %vm51_vm1, %v44_v7  ;;  %v804_v24 = vld [vmem:[%s1180_s5] ss:$8 sps:$4 sm:$0xff]   ;;  %v809_v25 = vld [vmem:[%s1180_s5 + $0xf4] ss:$8 sps:$4 sm:$0xff]   ;;  %v807_v26 = vld [vmem:[%s1180_s5 + $0xf0] ss:$8 sps:$4 sm:$0xff]  }
   0x9   :  { %381 = vmatpush1.bf16.msra.mxu0 %v783_v10  ;;  %v812_v27 = vld [vmem:[%s1180_s5 + $0xe4] ss:$8 sps:$4 sm:$0xff]   ;;  %v810_v28 = vld [vmem:[%s1180_s5 + $0xe0] ss:$8 sps:$4 sm:$0xff]   ;;  %v815_v29 = vld [vmem:[%s1180_s5 + $0xd4] ss:$8 sps:$4 sm:$0xff]  }
   0xa   :  { %382 = vmatprep.subr.bf16.mxu0 %v788_v11  ;;  %v813_v30 = vld [vmem:[%s1180_s5 + $0xd0] ss:$8 sps:$4 sm:$0xff]   ;;  %v818_v31 = vld [vmem:[%s1180_s5 + $0xc4] ss:$8 sps:$4 sm:$0xff]   ;;  %v816_v32 = vld [vmem:[%s1180_s5 + $0xc0] ss:$8 sps:$4 sm:$0xff]  }
   0xb   :  { %v821_v33 = vld [vmem:[%s1180_s5 + $0xb4] ss:$8 sps:$4 sm:$0xff]   ;;  %v819_v34 = vld [vmem:[%s1180_s5 + $0xb0] ss:$8 sps:$4 sm:$0xff]   ;;  %v824_v35 = vld [vmem:[%s1180_s5 + $0xa4] ss:$8 sps:$4 sm:$0xff]  }
   0xc   :  { %v822_v36 = vld [vmem:[%s1180_s5 + $0xa0] ss:$8 sps:$4 sm:$0xff]   ;;  %v827_v37 = vld [vmem:[%s1180_s5 + $0x94] ss:$8 sps:$4 sm:$0xff]   ;;  %v825_v38 = vld [vmem:[%s1180_s5 + $0x90] ss:$8 sps:$4 sm:$0xff]  }
   0xd   :  { %383 = vmatpush1.bf16.msra.mxu0 %v786_v12  ;;  %v830_v39 = vld [vmem:[%s1180_s5 + $0x84] ss:$8 sps:$4 sm:$0xff]   ;;  %v828_v40 = vld [vmem:[%s1180_s5 + $0x80] ss:$8 sps:$4 sm:$0xff]   ;;  %v831_v41 = vld [vmem:[%s1182_s7 + $0x70] ss:$8 sps:$4 sm:$0xff]  }
   0xe   :  { %384 = vmatprep.subr.bf16.mxu0 %v791_v13  ;;  %v833_v42 = vld [vmem:[%s1182_s7 + $0x74] ss:$8 sps:$4 sm:$0xff]   ;;  %v836_v43 = vld [vmem:[%s1182_s7 + $0x64] ss:$8 sps:$4 sm:$0xff]   ;;  %v834_v44 = vld [vmem:[%s1182_s7 + $0x60] ss:$8 sps:$4 sm:$0xff]  }
   0xf   :  { %629 = vmatprep.subr.bf16.mxu1 %v833_v42  ;;  %v839_v45 = vld [vmem:[%s1182_s7 + $0x54] ss:$8 sps:$4 sm:$0xff]   ;;  %v837_v46 = vld [vmem:[%s1182_s7 + $0x50] ss:$8 sps:$4 sm:$0xff]   ;;  %v842_v47 = vld [vmem:[%s1182_s7 + $0x44] ss:$8 sps:$4 sm:$0xff]  }
  0x10   :  { %630 = vmatpush1.bf16.msra.mxu1 %v831_v41  ;;  %v840_v48 = vld [vmem:[%s1182_s7 + $0x40] ss:$8 sps:$4 sm:$0xff]   ;;  %v845_v49 = vld [vmem:[%s1182_s7 + $0x34] ss:$8 sps:$4 sm:$0xff]   ;;  %v843_v50 = vld [vmem:[%s1182_s7 + $0x30] ss:$8 sps:$4 sm:$0xff]  }
  0x11   :  { %385 = vmatpush1.bf16.msra.mxu0 %v789_v14  ;;  %631 = vmatprep.subr.bf16.mxu1 %v836_v43  ;;  %v848_v51 = vld [vmem:[%s1182_s7 + $0x24] ss:$8 sps:$4 sm:$0xff]   ;;  %v846_v52 = vld [vmem:[%s1182_s7 + $0x20] ss:$8 sps:$4 sm:$0xff]   ;;  %v851_v53 = vld [vmem:[%s1182_s7 + $0x14] ss:$8 sps:$4 sm:$0xff]  }
  0x12   :  { %386 = vmatprep.subr.bf16.mxu0 %v794_v15  ;;  %v849_v54 = vld [vmem:[%s1182_s7 + $0x10] ss:$8 sps:$4 sm:$0xff]   ;;  %v854_v55 = vld [vmem:[%s1182_s7 + $0x4] ss:$8 sps:$4 sm:$0xff]   ;;  %v852_v56 = vld [vmem:[%s1182_s7] ss:$8 sps:$4 sm:$0xff]  }
  0x13   :  { %v857_v57 = vld [vmem:[%s1182_s7 + $0xf4] ss:$8 sps:$4 sm:$0xff]   ;;  %v855_v58 = vld [vmem:[%s1182_s7 + $0xf0] ss:$8 sps:$4 sm:$0xff]   ;;  %v860_v59 = vld [vmem:[%s1182_s7 + $0xe4] ss:$8 sps:$4 sm:$0xff]  }
  0x14   :  { %632 = vmatpush1.bf16.msra.mxu1 %v834_v44  ;;  %v858_v60 = vld [vmem:[%s1182_s7 + $0xe0] ss:$8 sps:$4 sm:$0xff]   ;;  %v863_v61 = vld [vmem:[%s1182_s7 + $0xd4] ss:$8 sps:$4 sm:$0xff]   ;;  %v861_v62 = vld [vmem:[%s1182_s7 + $0xd0] ss:$8 sps:$4 sm:$0xff]  }
  0x15   :  { %387 = vmatpush1.bf16.msra.mxu0 %v792_v16  ;;  %633 = vmatprep.subr.bf16.mxu1 %v839_v45  ;;  %v866_v63 = vld [vmem:[%s1182_s7 + $0xc4] ss:$8 sps:$4 sm:$0xff]   ;;  %v864_v0 = vld [vmem:[%s1182_s7 + $0xc0] ss:$8 sps:$4 sm:$0xff]   ;;  %v869_v1 = vld [vmem:[%s1182_s7 + $0xb4] ss:$8 sps:$4 sm:$0xff]   ;;  %v16_v45 = vstv %s1185_s10 }
  0x16   :  { %388 = vmatprep.subr.bf16.mxu0 %v797_v17  ;;  %v867_v2 = vld [vmem:[%s1182_s7 + $0xb0] ss:$8 sps:$4 sm:$0xff]   ;;  %v872_v3 = vld [vmem:[%s1182_s7 + $0xa4] ss:$8 sps:$4 sm:$0xff]   ;;  %v870_v4 = vld [vmem:[%s1182_s7 + $0xa0] ss:$8 sps:$4 sm:$0xff]  }
  0x17   :  { %v161_v6 = vshrl.u32 %v160_v5, 7  ;;  %v158_v8 = vld [vmem:[%s1183_s4] sm:$0x3]  ;;  %17 = vst [vmem:[#allocation2] sm:$0x1] %v16_v45 }
  0x18   :  { %634 = vmatpush1.bf16.msra.mxu1 %v837_v46  ;;  %v457_v46 = vld [vmem:[%s1186_s8] sm:$0x3] }
  0x19   :  { %389 = vmatpush1.bf16.msra.mxu0 %v795_v18  ;;  %635 = vmatprep.subr.bf16.mxu1 %v842_v47  ;;  %v1135_v7 = vsub.s32 0, %v161_v6  ;;  %v1140_v9 = vsub.s32 1, %v161_v6 }
  0x1a   :  { %390 = vmatprep.subr.bf16.mxu0 %v800_v19 }
  0x1b   :  { %v163_v10 = vrot.slane %v158_v8, %v1135_v7  ;;  %v167_v14 = vrot.slane %v158_v8, %v1140_v9  ;;  %v462_v47 = vrot.slane %v457_v46, %v1135_v7 }
  0x1c   :  { %636 = vmatpush1.bf16.msra.mxu1 %v840_v48  ;;  %v466_v48 = vrot.slane %v457_v46, %v1140_v9 }
  0x1d   :  { %391 = vmatpush1.bf16.msra.mxu0 %v798_v20  ;;  %637 = vmatprep.subr.bf16.mxu1 %v845_v49 }
  0x1e   :  { %392 = vmatprep.subr.bf16.mxu0 %v803_v21 }
  0x20   :  { %638 = vmatpush1.bf16.msra.mxu1 %v843_v50  ;;  %v672_v50 = vld [vmem:[%s1187_s9] sm:$0x3] }
  0x21   :  { %393 = vmatpush1.bf16.msra.mxu0 %v801_v22  ;;  %639 = vmatprep.subr.bf16.mxu1 %v848_v51 }
  0x22   :  { %394 = vmatprep.subr.bf16.mxu0 %v806_v23 }
  0x24   :  { %640 = vmatpush1.bf16.msra.mxu1 %v846_v52 }
  0x25   :  { %395 = vmatpush1.bf16.msra.mxu0 %v804_v24  ;;  %641 = vmatprep.subr.bf16.mxu1 %v851_v53 }
  0x26   :  { %396 = vmatprep.subr.bf16.mxu0 %v809_v25 }
  0x28   :  { %642 = vmatpush1.bf16.msra.mxu1 %v849_v54  ;;  %v677_v54 = vrot.slane %v672_v50, %v1135_v7 }
  0x29   :  { %397 = vmatpush2.bf16.msra.mxu0 %v807_v26  ;;  %643 = vmatprep.subr.bf16.mxu1 %v854_v55 }
  0x2a   :  { %398 = vmatprep.subr.bf16.mxu0 %v812_v27 }
  0x2c   :  { %644 = vmatpush1.bf16.msra.mxu1 %v852_v56  ;;  %v681_v56 = vrot.slane %v672_v50, %v1140_v9 }
  0x2d   :  { %399 = vmatpush2.bf16.msra.mxu0 %v810_v28  ;;  %645 = vmatprep.subr.bf16.mxu1 %v857_v57  ;;  %v875_v28 = vld [vmem:[%s1182_s7 + $0x94] ss:$8 sps:$4 sm:$0xff]  }
  0x2e   :  { %400 = vmatprep.subr.bf16.mxu0 %v815_v29  ;;  %v873_v29 = vld [vmem:[%s1182_s7 + $0x90] ss:$8 sps:$4 sm:$0xff]  }
  0x30   :  { %646 = vmatpush2.bf16.msra.mxu1 %v855_v58 }
  0x31   :  { %401 = vmatpush2.bf16.msra.mxu0 %v813_v30  ;;  %647 = vmatprep.subr.bf16.mxu1 %v860_v59  ;;  %v878_v30 = vld [vmem:[%s1182_s7 + $0x84] ss:$8 sps:$4 sm:$0xff]  }
  0x32   :  { %402 = vmatprep.subr.bf16.mxu0 %v818_v31  ;;  %v876_v31 = vld [vmem:[%s1182_s7 + $0x80] ss:$8 sps:$4 sm:$0xff]  }
  0x34   :  { %648 = vmatpush2.bf16.msra.mxu1 %v858_v60 }
  0x35   :  { %403 = vmatpush2.bf16.msra.mxu0 %v816_v32  ;;  %649 = vmatprep.subr.bf16.mxu1 %v863_v61  ;;  %v208_v32 = vld [vmem:[%s1184_s6] sm:$0x3] }
  0x36   :  { %404 = vmatprep.subr.bf16.mxu0 %v821_v33  ;;  %v213_v33 = vrot.slane %v208_v32, %v1135_v7 }
  0x38   :  { %650 = vmatpush2.bf16.msra.mxu1 %v861_v62 }
  0x39   :  { %405 = vmatpush2.bf16.msra.mxu0 %v819_v34  ;;  %651 = vmatprep.subr.bf16.mxu1 %v866_v63  ;;  %v217_v34 = vrot.slane %v208_v32, %v1140_v9 }
  0x3a   :  { %406 = vmatprep.subr.bf16.mxu0 %v824_v35 }
  0x3c   :  { %652 = vmatpush2.bf16.msra.mxu1 %v864_v0  ;;  %v776_v0 = vld [vmem:[#allocation2] ss:$0 sm:$0xff] }
  0x3d   :  { %407 = vmatpush2.bf16.msra.mxu0 %v822_v36  ;;  %653 = vmatprep.subr.bf16.mxu1 %v869_v1 }
  0x3e   :  { %408 = vmatprep.subr.bf16.mxu0 %v827_v37 }
  0x40   :  { %654 = vmatpush2.bf16.msra.mxu1 %v867_v2 }
  0x41   :  { %409 = vmatpush2.bf16.msra.mxu0 %v825_v38  ;;  %655 = vmatprep.subr.bf16.mxu1 %v872_v3 }
  0x42   :  { %410 = vmatprep.subr.bf16.mxu0 %v830_v39 }
  0x44   :  { %656 = vmatpush2.bf16.msra.mxu1 %v870_v4 }
  0x45   :  { %411 = vmatpush2.bf16.msra.mxu0 %v828_v40  ;;  %657 = vmatprep.subr.bf16.mxu1 %v875_v28 }
  0x48   :  { %658 = vmatpush2.bf16.msra.mxu1 %v873_v29 }
  0x49   :  { %659 = vmatprep.subr.bf16.mxu1 %v878_v30 }
  0x4c   :  { %660 = vmatpush2.bf16.msra.mxu1 %v876_v31 }
  0xc7   :  { %v151_v12 = vpop.f32.mrf.mxu1 }
  0xc8   :  { %v96_v11 = vpop.f32.mrf.mxu0 }
  0xc9   :  { %v152_v13 = vadd.f32 %v151_v12, %v96_v11  ;;  %v153_v16 = vpop.f32.mrf.mxu1 }
  0xca   :  { %v98_v15 = vpop.f32.mrf.mxu0 }
  0xcb   :  { %v170_v17 = vadd.f32 %v163_v10, %v152_v13  ;;  %v154_v18 = vadd.f32 %v153_v16, %v98_v15  ;;  %v155_v20 = vpop.f32.mrf.mxu1 }
  0xcc   :  { %v100_v19 = vpop.f32.mrf.mxu0 }
  0xcd   :  { %v171_v21 = vadd.f32 %v167_v14, %v154_v18  ;;  %v172_v22 = vmax.f32 %v170_v17, 0.0  ;;  %v156_v24 = vpop.f32.mrf.mxu1 }
  0xce   :  { %v101_v23 = vpop.f32.mrf.mxu0 }
  0xcf   :  { %v173_v25 = vmax.f32 %v171_v21, 0.0  ;;  %v174_v27 = vpack.c.bf16 %v172_v22, %v172_v22 }
  0xd1   :  { %v175_v26 = vpack.c.bf16 %v173_v25, %v173_v25 }
  0xd3   :  { %412 = vmatprep.mubr.bf16.mxu0 %v175_v26 }
  0xd4   :  { %413 = vmatmul.mubr.bf16.vlgmr.msra.gmra.mxu0 %v174_v27 }
 0x194   :  { %v414_v35 = vpop.f32.mrf.mxu0 }
 0x195   :  { %v415_v36 = vadd.f32 %v414_v35, %v213_v33 }
 0x196   :  { %v416_v37 = vpop.f32.mrf.mxu0 }
 0x197   :  { %v417_v38 = vadd.f32 %v416_v37, %v217_v34  ;;  %v421_v39 = vmax.f32 %v415_v36, 0.0 }
 0x198   :  { %v418_v40 = vpop.f32.mrf.mxu0 }
 0x199   :  { %v422_v41 = vmax.f32 %v417_v38, 0.0  ;;  %v423_v44 = vpack.c.bf16 %v421_v39, %v421_v39 }
 0x19a   :  { %v419_v42 = vpop.f32.mrf.mxu0 }
 0x19b   :  { %v424_v43 = vpack.c.bf16 %v422_v41, %v422_v41 }
 0x19d   :  { %661 = vmatprep.mubr.bf16.mxu1 %v424_v43 }
 0x19e   :  { %662 = vmatmul.mubr.bf16.vlgmr.msra.gmra.mxu1 %v423_v44 }
 0x25e   :  { %v663_v49 = vpop.f32.mrf.mxu1 }
 0x25f   :  { %v664_v51 = vadd.f32 %v663_v49, %v462_v47 }
 0x260   :  { %v665_v52 = vpop.f32.mrf.mxu1 }
 0x261   :  { %v670_v53 = vmax.f32 %v664_v51, 0.0  ;;  %v666_v55 = vadd.f32 %v665_v52, %v466_v48 }
 0x262   :  { %v667_v57 = vpop.f32.mrf.mxu1 }
 0x263   :  { %v671_v58 = vmax.f32 %v666_v55, 0.0  ;;  %v684_v60 = vmul.f32 %v677_v54, %v670_v53 }
 0x264   :  { %v668_v59 = vpop.f32.mrf.mxu1 }
 0x265   :  { %v685_v61 = vmul.f32 %v681_v56, %v671_v58 }
 0x267   :  { %v686_v62 = vadd.f32 %v685_v61, %v684_v60 }
 0x269   :  { %v688_v63 = vsel %vm687_vm3, %v686_v62, 0.0 }
 0x26a   :  { %689 = vadd.xlane.f32.xlu0 %v688_v63 }
 0x2f3   :  { %v690_v1 = vpop.xlane.xlu0 %689 }
 0x2f4   :  { %v698_v2 = vadd.f32 %v776_v0, %v690_v1 }
 0x2f6   :  { %700 = vst.msk [vmem:[%s1188_s11] sm:$0x3] %vm699_vm4, %v698_v2 }

</bundles_post_ra>
